<compile_context>
chip_gen: v5e
topology: v5e:2x2
jax: 0.10.0
libtpu: 0.0.40
codegen_flags: <defaults>
</compile_context>

<pallas_src>
import jax
import jax.numpy as jnp
from jax import lax
from jax.experimental import pallas as pl
from jax.experimental.pallas import tpu as pltpu


def rnn_kernel(ids_ref, tproj_ref, whh_ref, wfc_ref, bfc_ref, out_ref):
    ids = ids_ref[...]                        # (T, TB) int32, t-major token ids
    T, TB = ids.shape
    tproj = tproj_ref[...]                    # (V, H) = table @ W_ih^T + b_ih + b_hh
    V, H = tproj.shape
    whh = whh_ref[...]                        # (H, H) = W_hh^T (hoisted)

    # --- all-timestep input projection: ONE one-hot build + ONE MXU matmul ---
    # onehot[t, b, v] = (v == ids[t, b]); t-major row ordering after reshape.
    onehot = (lax.broadcasted_iota(jnp.int32, (T, TB, V), 2) == ids[:, :, None])
    onehot = onehot.astype(jnp.float32).reshape(T * TB, V)
    xw_all = jnp.dot(onehot, tproj, preferred_element_type=jnp.float32)  # (T*TB, H)

    # --- recurrence: only h @ W_hh^T + tanh remains on the serial chain ---
    h = jnp.zeros((TB, H), jnp.float32)       # h0 = 0 (PyTorch default)
    if T <= 16:
        # Small static trip count -> full unroll (LLO scheduling visibility).
        for t in range(T):
            xw = xw_all[t * TB:(t + 1) * TB, :]
            h = jnp.tanh(xw + jnp.dot(h, whh, preferred_element_type=jnp.float32))
    else:
        # Longer sequences: bound live ranges with fori_loop, small unroll.
        xw_3d = xw_all.reshape(T, TB, H)
        def body(t, h):
            xw = lax.dynamic_index_in_dim(xw_3d, t, axis=0, keepdims=False)
            return jnp.tanh(xw + jnp.dot(h, whh, preferred_element_type=jnp.float32))
        h = lax.fori_loop(0, T, body, h, unroll=2)

    # --- FC on the last hidden state; lane-dense (TB, 128) output ---
    logits = jnp.dot(h, wfc_ref[...], preferred_element_type=jnp.float32) + bfc_ref[...]
    out_ref[...] = logits.astype(out_ref.dtype)


def rnn_model_forward(sentences, params):
    """sentences: int (B, T) token ids. Returns logits (B, ntags) float32."""
    sentences = sentences.astype(jnp.int32)
    B, T = sentences.shape
    V, E = params["embedding"].shape
    H = params["w_hh"].shape[0]
    ntags = params["w_fc"].shape[0]

    # Batch tiling: TB rows per program (>=8 sublanes, <=128); grid axis is
    # "parallel" so v7x megacore shards batch tiles across its two TCs.
    if B <= 128:
        TB = max(8, ((B + 7) // 8) * 8)
        B_pad = TB
    else:
        TB = 128
        B_pad = ((B + 127) // 128) * 128
    n_tiles = B_pad // TB
    N_pad = 128                               # lane-dense logits output

    # t-major ids, padded batch rows use token id 0 (valid; sliced off below).
    ids_tmajor = jnp.zeros((T, B_pad), jnp.int32).at[:, :B].set(sentences.T)

    # Weight preprocessing (once per params): fuse embedding table, input
    # projection and both RNN biases into a single (V, H) array.
    emb = params["embedding"].astype(jnp.float32)
    table_proj = (emb @ params["w_ih"].T.astype(jnp.float32)
                  + (params["b_ih"] + params["b_hh"]).astype(jnp.float32))    # (V, H)
    whh_t = params["w_hh"].T.astype(jnp.float32)                              # (H, H)
    wfc_t = jnp.zeros((H, N_pad), jnp.float32).at[:, :ntags].set(params["w_fc"].T)
    bfc = jnp.zeros((1, N_pad), jnp.float32).at[:, :ntags].set(params["b_fc"])

    out_padded = pl.pallas_call(
        rnn_kernel,
        out_shape=jax.ShapeDtypeStruct((B_pad, N_pad), jnp.float32),
        grid_spec=pltpu.PrefetchScalarGridSpec(
            num_scalar_prefetch=0,
            grid=(n_tiles,),                                     # batch tiles
            in_specs=[
                pl.BlockSpec((T, TB), lambda j: (0, j)),         # ids (t-major)
                pl.BlockSpec((V, H), lambda j: (0, 0)),          # table @ W_ih^T + b
                pl.BlockSpec((H, H), lambda j: (0, 0)),          # W_hh^T
                pl.BlockSpec((H, N_pad), lambda j: (0, 0)),      # W_fc^T (lane padded)
                pl.BlockSpec((1, N_pad), lambda j: (0, 0)),      # b_fc   (lane padded)
            ],
            out_specs=pl.BlockSpec((TB, N_pad), lambda j: (j, 0)),
        ),
        compiler_params=pltpu.CompilerParams(
            dimension_semantics=("parallel",),
            # NOTE: at toy sizes the VMEM footprint (incl. double-buffering of
            # the constant-index weight blocks) is tiny; raise vmem_limit_bytes
            # here only when V*H grows toward the 32 MiB scoped default.
        ),
    )(ids_tmajor, table_proj, whh_t, wfc_t, bfc)

    return out_padded[:B, :ntags]


def xavier_uniform(key, shape, dtype=jnp.float32):
    fan_out, fan_in = shape[0], shape[1]
    bound = (6.0 / (fan_in + fan_out)) ** 0.5
    return jax.random.uniform(key, shape, dtype, minval=-bound, maxval=bound)


def init_params(key, nwords, ntags, emb_size, hidden_size):
    k = jax.random.split(key, 4)
    return {
        # nn.Embedding weight (nwords, emb_size), xavier_uniform per init_weights()
        "embedding": xavier_uniform(k[0], (nwords, emb_size)),
        # nn.RNN weights: weight_ih_l0 (H, E), weight_hh_l0 (H, H); biases = 0
        "w_ih": xavier_uniform(k[1], (hidden_size, emb_size)),
        "w_hh": xavier_uniform(k[2], (hidden_size, hidden_size)),
        "b_ih": jnp.zeros((hidden_size,), jnp.float32),
        "b_hh": jnp.zeros((hidden_size,), jnp.float32),
        # nn.Linear: weight (ntags, H), bias = 0
        "w_fc": xavier_uniform(k[3], (ntags, hidden_size)),
        "b_fc": jnp.zeros((ntags,), jnp.float32),
    }


def reference_forward(sentences, params):
    """Pure-JAX reference matching PyTorch RNNModel.forward semantics."""
    embeds = jnp.take(params["embedding"], sentences, axis=0)  # (B, T, E)
    B, T, E = embeds.shape
    H = params["w_hh"].shape[0]
    h = jnp.zeros((B, H), jnp.float32)
    for t in range(T):
        h = jnp.tanh(
            embeds[:, t, :] @ params["w_ih"].T + params["b_ih"]
            + h @ params["w_hh"].T + params["b_hh"]
        )
    return h @ params["w_fc"].T + params["b_fc"]


if __name__ == "__main__":
    nwords, ntags = 50, 5
    emb_size, hidden_size = 32, 32
    batch, seq_len = 4, 8

    key = jax.random.PRNGKey(0)
    pkey, skey = jax.random.split(key)
    params = init_params(pkey, nwords, ntags, emb_size, hidden_size)

    sentences = jax.random.randint(skey, (batch, seq_len), 0, nwords, dtype=jnp.int32)

    logits = rnn_model_forward(sentences, params)
    logits = jax.block_until_ready(logits)

    ref = reference_forward(sentences, params)
    assert logits.shape == (batch, ntags)
    assert jnp.allclose(logits, ref, atol=1e-4, rtol=1e-4), "mismatch vs reference"

    print("KERNEL_OK")
</pallas_src>

<mosaic_0001>
module attributes {stable_mosaic.version = 11 : i64} {
  func.func @rnn_kernel(%arg0: i32, %arg1: memref<8x8xi32, #tpu.memory_space<vmem>>, %arg2: memref<50x32xf32, #tpu.memory_space<vmem>>, %arg3: memref<32x32xf32, #tpu.memory_space<vmem>>, %arg4: memref<32x128xf32, #tpu.memory_space<vmem>>, %arg5: memref<1x128xf32, #tpu.memory_space<vmem>>, %arg6: memref<8x128xf32, #tpu.memory_space<vmem>>) attributes {dimension_semantics = [#tpu.dimension_semantics<parallel>], iteration_bounds = array<i64: 1>, scalar_prefetch = 0 : i64, scratch_operands = 0 : i64, tpu.core_type = #tpu.core_type<tc>, window_params = [{transform_indices = @transform_0, window_bounds = array<i64: 8, 8>}, {pipeline_mode = #tpu.pipeline_mode<synchronous>, transform_indices = @transform_1, window_bounds = array<i64: 50, 32>}, {pipeline_mode = #tpu.pipeline_mode<synchronous>, transform_indices = @transform_2, window_bounds = array<i64: 32, 32>}, {pipeline_mode = #tpu.pipeline_mode<synchronous>, transform_indices = @transform_3, window_bounds = array<i64: 32, 128>}, {pipeline_mode = #tpu.pipeline_mode<synchronous>, transform_indices = @transform_4, window_bounds = array<i64: 1, 128>}, {transform_indices = @transform_5, window_bounds = array<i64: 8, 128>}]} {
    %c0 = arith.constant 0 : index
    %c0_0 = arith.constant 0 : index
    %0 = vector.load %arg1[%c0, %c0_0] : memref<8x8xi32, #tpu.memory_space<vmem>>, vector<8x8xi32>
    %c0_1 = arith.constant 0 : index
    %c0_2 = arith.constant 0 : index
    %1 = vector.load %arg2[%c0_1, %c0_2] : memref<50x32xf32, #tpu.memory_space<vmem>>, vector<50x32xf32>
    %c0_3 = arith.constant 0 : index
    %c0_4 = arith.constant 0 : index
    %2 = vector.load %arg3[%c0_3, %c0_4] : memref<32x32xf32, #tpu.memory_space<vmem>>, vector<32x32xf32>
    %3 = tpu.iota {dimensions = array<i32: 2>} : vector<8x8x50xi32>
    %4 = vector.shape_cast %0 : vector<8x8xi32> to vector<8x8x1xi32>
    %5 = vector.broadcast %4 : vector<8x8x1xi32> to vector<8x8x50xi32>
    %6 = arith.cmpi eq, %3, %5 : vector<8x8x50xi32>
    %7 = arith.extui %6 : vector<8x8x50xi1> to vector<8x8x50xi32>
    %8 = arith.sitofp %7 : vector<8x8x50xi32> to vector<8x8x50xf32>
    %9 = vector.shape_cast %8 : vector<8x8x50xf32> to vector<64x50xf32>
    %cst = arith.constant dense<0.000000e+00> : vector<64x32xf32>
    %10 = tpu.matmul %9, %1, %cst {dimension_numbers = #tpu.dot_dimension_numbers<[1], [0], [0], [1], [0, 0, 1, 1], [], []>} : vector<64x50xf32>, vector<50x32xf32>, vector<64x32xf32> -> vector<64x32xf32>
    %cst_5 = arith.constant 0.000000e+00 : f32
    %11 = vector.broadcast %cst_5 : f32 to vector<8x32xf32>
    %12 = vector.extract_strided_slice %10 {offsets = [0, 0], sizes = [8, 32], strides = [1, 1]} : vector<64x32xf32> to vector<8x32xf32>
    %cst_6 = arith.constant dense<0.000000e+00> : vector<8x32xf32>
    %13 = tpu.matmul %11, %2, %cst_6 {dimension_numbers = #tpu.dot_dimension_numbers<[1], [0], [0], [1], [0, 0, 1, 1], [], []>} : vector<8x32xf32>, vector<32x32xf32>, vector<8x32xf32> -> vector<8x32xf32>
    %14 = arith.addf %12, %13 : vector<8x32xf32>
    %15 = math.tanh %14 : vector<8x32xf32>
    %16 = vector.extract_strided_slice %10 {offsets = [8, 0], sizes = [8, 32], strides = [1, 1]} : vector<64x32xf32> to vector<8x32xf32>
    %cst_7 = arith.constant dense<0.000000e+00> : vector<8x32xf32>
    %17 = tpu.matmul %15, %2, %cst_7 {dimension_numbers = #tpu.dot_dimension_numbers<[1], [0], [0], [1], [0, 0, 1, 1], [], []>} : vector<8x32xf32>, vector<32x32xf32>, vector<8x32xf32> -> vector<8x32xf32>
    %18 = arith.addf %16, %17 : vector<8x32xf32>
    %19 = math.tanh %18 : vector<8x32xf32>
    %20 = vector.extract_strided_slice %10 {offsets = [16, 0], sizes = [8, 32], strides = [1, 1]} : vector<64x32xf32> to vector<8x32xf32>
    %cst_8 = arith.constant dense<0.000000e+00> : vector<8x32xf32>
    %21 = tpu.matmul %19, %2, %cst_8 {dimension_numbers = #tpu.dot_dimension_numbers<[1], [0], [0], [1], [0, 0, 1, 1], [], []>} : vector<8x32xf32>, vector<32x32xf32>, vector<8x32xf32> -> vector<8x32xf32>
    %22 = arith.addf %20, %21 : vector<8x32xf32>
    %23 = math.tanh %22 : vector<8x32xf32>
    %24 = vector.extract_strided_slice %10 {offsets = [24, 0], sizes = [8, 32], strides = [1, 1]} : vector<64x32xf32> to vector<8x32xf32>
    %cst_9 = arith.constant dense<0.000000e+00> : vector<8x32xf32>
    %25 = tpu.matmul %23, %2, %cst_9 {dimension_numbers = #tpu.dot_dimension_numbers<[1], [0], [0], [1], [0, 0, 1, 1], [], []>} : vector<8x32xf32>, vector<32x32xf32>, vector<8x32xf32> -> vector<8x32xf32>
    %26 = arith.addf %24, %25 : vector<8x32xf32>
    %27 = math.tanh %26 : vector<8x32xf32>
    %28 = vector.extract_strided_slice %10 {offsets = [32, 0], sizes = [8, 32], strides = [1, 1]} : vector<64x32xf32> to vector<8x32xf32>
    %cst_10 = arith.constant dense<0.000000e+00> : vector<8x32xf32>
    %29 = tpu.matmul %27, %2, %cst_10 {dimension_numbers = #tpu.dot_dimension_numbers<[1], [0], [0], [1], [0, 0, 1, 1], [], []>} : vector<8x32xf32>, vector<32x32xf32>, vector<8x32xf32> -> vector<8x32xf32>
    %30 = arith.addf %28, %29 : vector<8x32xf32>
    %31 = math.tanh %30 : vector<8x32xf32>
    %32 = vector.extract_strided_slice %10 {offsets = [40, 0], sizes = [8, 32], strides = [1, 1]} : vector<64x32xf32> to vector<8x32xf32>
    %cst_11 = arith.constant dense<0.000000e+00> : vector<8x32xf32>
    %33 = tpu.matmul %31, %2, %cst_11 {dimension_numbers = #tpu.dot_dimension_numbers<[1], [0], [0], [1], [0, 0, 1, 1], [], []>} : vector<8x32xf32>, vector<32x32xf32>, vector<8x32xf32> -> vector<8x32xf32>
    %34 = arith.addf %32, %33 : vector<8x32xf32>
    %35 = math.tanh %34 : vector<8x32xf32>
    %36 = vector.extract_strided_slice %10 {offsets = [48, 0], sizes = [8, 32], strides = [1, 1]} : vector<64x32xf32> to vector<8x32xf32>
    %cst_12 = arith.constant dense<0.000000e+00> : vector<8x32xf32>
    %37 = tpu.matmul %35, %2, %cst_12 {dimension_numbers = #tpu.dot_dimension_numbers<[1], [0], [0], [1], [0, 0, 1, 1], [], []>} : vector<8x32xf32>, vector<32x32xf32>, vector<8x32xf32> -> vector<8x32xf32>
    %38 = arith.addf %36, %37 : vector<8x32xf32>
    %39 = math.tanh %38 : vector<8x32xf32>
    %40 = vector.extract_strided_slice %10 {offsets = [56, 0], sizes = [8, 32], strides = [1, 1]} : vector<64x32xf32> to vector<8x32xf32>
    %cst_13 = arith.constant dense<0.000000e+00> : vector<8x32xf32>
    %41 = tpu.matmul %39, %2, %cst_13 {dimension_numbers = #tpu.dot_dimension_numbers<[1], [0], [0], [1], [0, 0, 1, 1], [], []>} : vector<8x32xf32>, vector<32x32xf32>, vector<8x32xf32> -> vector<8x32xf32>
    %42 = arith.addf %40, %41 : vector<8x32xf32>
    %43 = math.tanh %42 : vector<8x32xf32>
    %c0_14 = arith.constant 0 : index
    %c0_15 = arith.constant 0 : index
    %44 = vector.load %arg4[%c0_14, %c0_15] : memref<32x128xf32, #tpu.memory_space<vmem>>, vector<32x128xf32>
    %cst_16 = arith.constant dense<0.000000e+00> : vector<8x128xf32>
    %45 = tpu.matmul %43, %44, %cst_16 {dimension_numbers = #tpu.dot_dimension_numbers<[1], [0], [0], [1], [0, 0, 1, 1], [], []>} : vector<8x32xf32>, vector<32x128xf32>, vector<8x128xf32> -> vector<8x128xf32>
    %c0_17 = arith.constant 0 : index
    %c0_18 = arith.constant 0 : index
    %46 = vector.load %arg5[%c0_17, %c0_18] : memref<1x128xf32, #tpu.memory_space<vmem>>, vector<1x128xf32>
    %47 = vector.broadcast %46 : vector<1x128xf32> to vector<8x128xf32>
    %48 = arith.addf %45, %47 : vector<8x128xf32>
    %c0_19 = arith.constant 0 : index
    %c0_20 = arith.constant 0 : index
    %49 = vector.load %arg6[%c0_19, %c0_20] : memref<8x128xf32, #tpu.memory_space<vmem>>, vector<8x128xf32>
    tpu.vector_store %arg6[%c0_19, %c0_20], %48 {strides = array<i32>} : memref<8x128xf32, #tpu.memory_space<vmem>>, vector<8x128xf32>,
    return
  }
  func.func @transform_0(%arg0: i32) -> (i32, i32) {
    %c0_i32 = arith.constant 0 : i32
    %c0_i32_0 = arith.constant 0 : i32
    return %c0_i32, %arg0 : i32, i32
  }
  func.func @transform_1(%arg0: i32) -> (i32, i32) {
    %c0_i32 = arith.constant 0 : i32
    %c0_i32_0 = arith.constant 0 : i32
    %c0_i32_1 = arith.constant 0 : i32
    return %c0_i32, %c0_i32_0 : i32, i32
  }
  func.func @transform_2(%arg0: i32) -> (i32, i32) {
    %c0_i32 = arith.constant 0 : i32
    %c0_i32_0 = arith.constant 0 : i32
    %c0_i32_1 = arith.constant 0 : i32
    return %c0_i32, %c0_i32_0 : i32, i32
  }
  func.func @transform_3(%arg0: i32) -> (i32, i32) {
    %c0_i32 = arith.constant 0 : i32
    %c0_i32_0 = arith.constant 0 : i32
    %c0_i32_1 = arith.constant 0 : i32
    return %c0_i32, %c0_i32_0 : i32, i32
  }
  func.func @transform_4(%arg0: i32) -> (i32, i32) {
    %c0_i32 = arith.constant 0 : i32
    %c0_i32_0 = arith.constant 0 : i32
    %c0_i32_1 = arith.constant 0 : i32
    return %c0_i32, %c0_i32_0 : i32, i32
  }
  func.func @transform_5(%arg0: i32) -> (i32, i32) {
    %c0_i32 = arith.constant 0 : i32
    %c0_i32_0 = arith.constant 0 : i32
    return %arg0, %c0_i32 : i32, i32
  }
}

</mosaic_0001>

<bundles_post_ra>
// kernel: tpu_custom_call.1
= control target key start
LH: loop header
LB: loop body
LE: loop exit
PB: predicated region body
PF: predicated region fallthrough
CT: control target
= control target key end

     0   :  { %v33_v0 = vlaneseq  ;;  %vm140_vm0 = vcmask 1041408   ;;  %s692_s0 = inlined_call_operand.vmem [shape: s32[8,8], index: 0, kind: input, shape index: {}]   ;;  %s693_s1 = inlined_call_operand.vmem [shape: f32[50,32], index: 1, kind: input, shape index: {}]   ;;  %s694_s2 = inlined_call_operand.vmem [shape: f32[32,32], index: 2, kind: input, shape index: {}]   ;;  %s695_s3 = inlined_call_operand.vmem [shape: f32[32,128], index: 3, kind: input, shape index: {}]   ;;  %s696_s4 = inlined_call_operand.vmem [shape: f32[1,128], index: 4, kind: input, shape index: {}]   ;;  %s697_s5 = inlined_call_operand.hbm [shape: f32[8,128], index: 5, kind: output, shape index: {}]  }
   0x1   :  { %v28_v1 = vld [vmem:[%s693_s1 + $0x30] sm:$0x3]  ;;  %v27_v2 = vld [vmem:[%s693_s1 + $0x28] sm:$0xff]  ;;  %v26_v4 = vld [vmem:[%s693_s1 + $0x20] sm:$0xff] }
   0x2   :  { %459 = vmatpush.msk.msra.mxu1 %vm140_vm0, %v28_v1  ;;  %442 = vmatpush.msk.msra.mxu0 %vm140_vm0, %v28_v1  ;;  %v37_v3 = vshrl.u32 %v33_v0, 7 }
   0x3   :  { %460 = vmatpush.msk.msra.mxu2 %vm140_vm0, %v28_v1  ;;  %461 = vmatpush.msk.msra.mxu3 %vm140_vm0, %v28_v1 }
   0x4   :  { %462 = vmatpush.msra.mxu1 %v27_v2  ;;  %154 = vmatpush.msra.mxu0 %v27_v2 }
   0x5   :  { %10 = vsyncpa [#allocation3], 0  ;;  %482 = vset.pattern.permute.xlu0 %v37_v3  ;;  %483 = vset.pattern.permute.xlu1 %v37_v3  ;;  %v25_v5 = vld [vmem:[%s693_s1 + $0x18] sm:$0xff]  ;;  %v576_v6 = vld [vmem:[%s692_s0] sm:$0xff]  ;;  %v626_v20 = vand.u32 127, %v33_v0  ;;  %vm115_vm1 = vcmask 408576  }
   0x6   :  { %465 = vmatpush.msra.mxu1 %v26_v4  ;;  %155 = vmatpush.msra.mxu0 %v26_v4  ;;  %v24_v7 = vld [vmem:[%s693_s1 + $0x10] sm:$0xff]  ;;  %v63_v8 = vperm.slane %v576_v6, 4  ;;  %v70_v9 = vperm.slane %v576_v6, 5  ;;  %v23_v10 = vld [vmem:[%s693_s1 + $0x8] sm:$0xff]  ;;  %v35_v11 = vperm.slane %v576_v6, 0  ;;  %v42_v12 = vperm.slane %v576_v6, 1 }
   0x7   :  { %463 = vmatpush.msra.mxu2 %v27_v2  ;;  %484 = vset.pattern.permute.xlu2 %v37_v3  ;;  %v49_v13 = vperm.slane %v576_v6, 2  ;;  %v22_v14 = vld [vmem:[%s693_s1] sm:$0xff]  ;;  %v595_v15 = vld [vmem:[%s694_s2 + $0x18] sm:$0xff]  ;;  %v600_v16 = vld [vmem:[%s694_s2 + $0x10] sm:$0xff]  ;;  %v56_v19 = vperm.slane %v576_v6, 3  ;;  %v528_v23 = vmov 0.0  }
   0x8   :  { %468 = vmatpush.msra.mxu1 %v25_v5  ;;  %156 = vmatpush.msra.mxu0 %v25_v5  ;;  %v607_v17 = vld [vmem:[%s694_s2 + $0x8] sm:$0xff]  ;;  %v618_v18 = vld [vmem:[%s694_s2] sm:$0xff]  ;;  %v77_v34 = vperm.slane %v576_v6, 6  ;;  %v84_v35 = vperm.slane %v576_v6, 7  ;;  %vm185_vm8 = vcmask 261120   ;;  %v388_v6 = vld [vmem:[%s695_s3 + $0x10] sm:$0xff] }
   0x9   :  { %466 = vmatpush.msra.mxu2 %v26_v4  ;;  %464 = vmatpush.msra.mxu3 %v27_v2  ;;  %s529_s24 = smov [#allocation2]   ;;  %s425_s28 = sshll.u32 %s697_s5, 4  ;;  %s426_s28 = int_to_ptr.hbm [resolvable:$true] %s425_s28 }
   0xa   :  { %471 = vmatpush.msra.mxu1 %v24_v7  ;;  %157 = vmatpush.msra.mxu0 %v24_v7  ;;  %s423_s25 = sshll.u32 %s529_s24, 4  ;;  %s424_s25 = int_to_ptr.vmem [resolvable:$true] %s423_s25 }
   0xb   :  { %469 = vmatpush.msra.mxu2 %v25_v5  ;;  %467 = vmatpush.msra.mxu3 %v26_v4 }
   0xc   :  { %474 = vmatpush.msra.mxu1 %v23_v10  ;;  %158 = vmatpush.msra.mxu0 %v23_v10 }
   0xd   :  { %68 = vperm.xlu0 %482, %v63_v8   ;;  %75 = vperm.xlu1 %483, %v70_v9   ;;  %v386_v8 = vld [vmem:[%s695_s3] sm:$0xff] }
   0xe   :  { %472 = vmatpush.msra.mxu2 %v24_v7  ;;  %470 = vmatpush.msra.mxu3 %v25_v5  ;;  %v389_v5 = vld [vmem:[%s695_s3 + $0x18] sm:$0xff] }
   0xf   :  { %477 = vmatpush.msra.mxu1 %v22_v14  ;;  %159 = vmatpush.msra.mxu0 %v22_v14 }
  0x10   :  { %475 = vmatpush.msra.mxu2 %v23_v10  ;;  %473 = vmatpush.msra.mxu3 %v24_v7  ;;  %v387_v7 = vld [vmem:[%s695_s3 + $0x8] sm:$0xff] }
  0x11   :  { %201 = vmatpush.msrb.mxu1 %v595_v15  ;;  %82 = vperm.xlu2 %484, %v77_v34  }
  0x12   :  { %476 = vmatpush.msra.mxu3 %v23_v10  ;;  %478 = vmatpush.msra.mxu2 %v22_v14 }
  0x13   :  { %202 = vmatpush.msrb.mxu1 %v600_v16 }
  0x14   :  { %479 = vmatpush.msra.mxu3 %v22_v14  ;;  %226 = vmatpush.msrb.mxu2 %v595_v15 }
  0x15   :  { %40 = vperm.xlu0 %482, %v35_v11   ;;  %47 = vperm.xlu1 %483, %v42_v12   ;;  %v485_v12 = vld [vmem:[%s696_s4] ss:$0 sm:$0xff] }
  0x16   :  { %251 = vmatpush.msrb.mxu3 %v595_v15  ;;  %227 = vmatpush.msrb.mxu2 %v600_v16 }
  0x17   :  { %203 = vmatpush.msrb.mxu1 %v607_v17 }
  0x18   :  { %252 = vmatpush.msrb.mxu3 %v600_v16  ;;  %228 = vmatpush.msrb.mxu2 %v607_v17 }
  0x19   :  { %204 = vmatpush.msrb.mxu1 %v618_v18  ;;  %89 = vperm.xlu2 %484, %v84_v35  }
  0x1a   :  { %253 = vmatpush.msrb.mxu3 %v607_v17  ;;  %229 = vmatpush.msrb.mxu2 %v618_v18 }
  0x1c   :  { %254 = vmatpush.msrb.mxu3 %v618_v18 }
  0x1d   :  { %54 = vperm.xlu0 %482, %v49_v13   ;;  %61 = vperm.xlu1 %483, %v56_v19  }
  0x6b   :  { %v83_v41 = vpop.permute.xlu2 %82 }
  0x6c   :  { %vm97_vm9 = vcmp.eq.s32.totalorder %v626_v20, %v83_v41 }
  0x6d   :  { %v440_v42 = vsel %vm97_vm9, 1.0, %v528_v23 }
  0x6e   :  { %449 = vmatmul.msk.f32.vlgmr.msra.gmra.mxu3 %vm115_vm1, %v440_v42 }
  0x6f   :  { %326 = vmatpush.msra.mxu3 %v595_v15 }
  0x71   :  { %327 = vmatpush.msra.mxu3 %v600_v16 }
  0x73   :  { %v90_v43 = vpop.permute.xlu2 %89  ;;  %328 = vmatpush.msra.mxu3 %v607_v17 }
  0x74   :  { %vm98_vm10 = vcmp.eq.s32.totalorder %v626_v20, %v90_v43 }
  0x75   :  { %v441_v44 = vsel %vm98_vm10, 1.0, %v528_v23  ;;  %329 = vmatpush.msra.mxu3 %v618_v18 }
  0x76   :  { %450 = vmatmul.msk.f32.gmra.mxu3 %vm115_vm1, %v441_v44 }
  0x7f   :  { %v69_v21 = vpop.permute.xlu0 %68  ;;  %v76_v22 = vpop.permute.xlu1 %75 }
  0x80   :  { %vm95_vm2 = vcmp.eq.s32.totalorder %v626_v20, %v69_v21  ;;  %vm96_vm3 = vcmp.eq.s32.totalorder %v626_v20, %v76_v22 }
  0x81   :  { %v438_v24 = vsel %vm95_vm2, 1.0, %v528_v23  ;;  %v439_v25 = vsel %vm96_vm3, 1.0, %v528_v23 }
  0x82   :  { %447 = vmatmul.msk.f32.vlgmr.msra.gmra.mxu1 %vm115_vm1, %v438_v24  ;;  %448 = vmatmul.msk.f32.vlgmr.msra.gmra.mxu2 %vm115_vm1, %v439_v25 }
  0x83   :  { %276 = vmatpush.msra.mxu1 %v595_v15  ;;  %301 = vmatpush.msra.mxu2 %v595_v15 }
  0x85   :  { %277 = vmatpush.msra.mxu1 %v600_v16  ;;  %302 = vmatpush.msra.mxu2 %v600_v16 }
  0x87   :  { %v41_v26 = vpop.permute.xlu0 %40  ;;  %278 = vmatpush.msra.mxu1 %v607_v17  ;;  %303 = vmatpush.msra.mxu2 %v607_v17  ;;  %v48_v28 = vpop.permute.xlu1 %47 }
  0x88   :  { %vm91_vm4 = vcmp.eq.s32.totalorder %v626_v20, %v41_v26  ;;  %vm92_vm5 = vcmp.eq.s32.totalorder %v626_v20, %v48_v28 }
  0x89   :  { %v434_v27 = vsel %vm91_vm4, 1.0, %v528_v23  ;;  %279 = vmatpush.msra.mxu1 %v618_v18  ;;  %304 = vmatpush.msra.mxu2 %v618_v18  ;;  %v435_v29 = vsel %vm92_vm5, 1.0, %v528_v23 }
  0x8a   :  { %443 = vmatmul.msk.f32.vlgmr.msra.gmra.mxu0 %vm115_vm1, %v434_v27  ;;  %205 = vmatmul.f32.vlgmr.msrb.gmra.mxu1 %v528_v23 }
  0x8b   :  { %351 = vmatpush.msrb.mxu1 %v595_v15 }
  0x8d   :  { %352 = vmatpush.msrb.mxu1 %v600_v16 }
  0x8f   :  { %353 = vmatpush.msrb.mxu1 %v607_v17  ;;  %v55_v30 = vpop.permute.xlu0 %54  ;;  %v62_v32 = vpop.permute.xlu1 %61 }
  0x90   :  { %vm93_vm6 = vcmp.eq.s32.totalorder %v626_v20, %v55_v30  ;;  %vm94_vm7 = vcmp.eq.s32.totalorder %v626_v20, %v62_v32 }
  0x91   :  { %354 = vmatpush.msrb.mxu1 %v618_v18  ;;  %v436_v31 = vsel %vm93_vm6, 1.0, %v528_v23  ;;  %v437_v33 = vsel %vm94_vm7, 1.0, %v528_v23 }
  0x92   :  { %444 = vmatmul.msk.f32.gmra.mxu0 %vm115_vm1, %v435_v29 }
  0x9a   :  { %445 = vmatmul.msk.f32.gmra.mxu0 %vm115_vm1, %v436_v31 }
  0xa2   :  { %446 = vmatmul.msk.f32.gmra.mxu0 %vm115_vm1, %v437_v33 }
  0xf1   :  { %v179_v50 = vpop.f32.mrf.mxu3 }
  0xf9   :  { %v182_v51 = vpop.f32.mrf.mxu3 }
  0xff   :  { %v173_v36 = vpop.f32.mrf.mxu1 }
 0x105   :  { %v176_v45 = vpop.f32.mrf.mxu2 }
 0x107   :  { %v161_v37 = vpop.f32.mrf.mxu0  ;;  %v206_v38 = vpop.f32.mrf.mxu1 }
 0x108   :  { %v209_v39 = vadd.f32 %v206_v38, %v161_v37 }
 0x10a   :  { %486 = vtanh.f32 %v209_v39 }
 0x10f   :  { %v164_v46 = vpop.f32.mrf.mxu0 }
 0x110   :  { %v487_v40 = vpop.eup %486 }
 0x111   :  { %451 = vmatmul.msk.f32.vlgmr.msrb.gmra.mxu2 %vm185_vm8, %v487_v40 }
 0x112   :  { %376 = vmatpush.msrb.mxu2 %v595_v15 }
 0x114   :  { %377 = vmatpush.msrb.mxu2 %v600_v16 }
 0x116   :  { %378 = vmatpush.msrb.mxu2 %v607_v17 }
 0x117   :  { %v167_v52 = vpop.f32.mrf.mxu0 }
 0x118   :  { %379 = vmatpush.msrb.mxu2 %v618_v18 }
 0x11f   :  { %v170_v56 = vpop.f32.mrf.mxu0 }
 0x194   :  { %v231_v47 = vpop.f32.mrf.mxu2 }
 0x195   :  { %v234_v48 = vadd.f32 %v231_v47, %v164_v46 }
 0x197   :  { %488 = vtanh.f32 %v234_v48 }
 0x19d   :  { %v489_v49 = vpop.eup %488 }
 0x19e   :  { %452 = vmatmul.msk.f32.vlgmr.msrb.gmra.mxu3 %vm185_vm8, %v489_v49 }
 0x19f   :  { %409 = vmatpush.msrb.mxu3 %v389_v5 }
 0x1a1   :  { %410 = vmatpush.msrb.mxu3 %v388_v6 }
 0x1a3   :  { %411 = vmatpush.msrb.mxu3 %v387_v7 }
 0x1a5   :  { %412 = vmatpush.msrb.mxu3 %v386_v8 }
 0x221   :  { %v256_v53 = vpop.f32.mrf.mxu3 }
 0x222   :  { %v259_v54 = vadd.f32 %v256_v53, %v167_v52 }
 0x224   :  { %490 = vtanh.f32 %v259_v54 }
 0x22a   :  { %v491_v55 = vpop.eup %490 }
 0x22b   :  { %453 = vmatmul.msk.f32.vlgmr.msra.gmra.mxu1 %vm185_vm8, %v491_v55 }
 0x2a8   :  { %v281_v57 = vpop.f32.mrf.mxu1 }
 0x2a9   :  { %v284_v58 = vadd.f32 %v281_v57, %v170_v56 }
 0x2ab   :  { %492 = vtanh.f32 %v284_v58 }
 0x2b1   :  { %v493_v59 = vpop.eup %492 }
 0x2b2   :  { %454 = vmatmul.msk.f32.vlgmr.msra.gmra.mxu2 %vm185_vm8, %v493_v59 }
 0x335   :  { %v306_v60 = vpop.f32.mrf.mxu2 }
 0x336   :  { %v309_v61 = vadd.f32 %v306_v60, %v173_v36 }
 0x338   :  { %494 = vtanh.f32 %v309_v61 }
 0x33e   :  { %v495_v62 = vpop.eup %494 }
 0x33f   :  { %455 = vmatmul.msk.f32.vlgmr.msra.gmra.mxu3 %vm185_vm8, %v495_v62 }
 0x3c2   :  { %v331_v63 = vpop.f32.mrf.mxu3 }
 0x3c3   :  { %v334_v0 = vadd.f32 %v331_v63, %v176_v45 }
 0x3c5   :  { %496 = vtanh.f32 %v334_v0 }
 0x3cb   :  { %v497_v1 = vpop.eup %496 }
 0x3cc   :  { %456 = vmatmul.msk.f32.vlgmr.msrb.gmra.mxu1 %vm185_vm8, %v497_v1 }
 0x449   :  { %v356_v2 = vpop.f32.mrf.mxu1 }
 0x44a   :  { %v359_v3 = vadd.f32 %v356_v2, %v179_v50 }
 0x44c   :  { %498 = vtanh.f32 %v359_v3 }
 0x452   :  { %v499_v4 = vpop.eup %498 }
 0x453   :  { %457 = vmatmul.msk.f32.vlgmr.msrb.gmra.mxu2 %vm185_vm8, %v499_v4 }
 0x4d6   :  { %v381_v9 = vpop.f32.mrf.mxu2 }
 0x4d7   :  { %v384_v10 = vadd.f32 %v381_v9, %v182_v51 }
 0x4d9   :  { %500 = vtanh.f32 %v384_v10 }
 0x4df   :  { %v501_v11 = vpop.eup %500 }
 0x4e0   :  { %458 = vmatmul.msk.f32.vlgmr.msrb.gmra.mxu3 %vm185_vm8, %v501_v11 }
 0x563   :  { %v414_v13 = vpop.f32.mrf.mxu3 }
 0x564   :  { %v415_v14 = vadd.f32 %v485_v12, %v414_v13 }
 0x566   :  { %417 = vst [vmem:[#allocation2] sm:$0xff] %v415_v14 }
 0x567   :  { %428 = dma.vmem_to_hbm [thread:$0]  %s424_s25, 128, %s426_s28, [#allocation3]  }
 0x568   :  { %526 = dma.done.wait [#allocation3], 128  }
 0x569   :  { %527 = vsyncadd [#allocation3], 4294967168 }
 0x56a   :  { %433 = vsyncpa [#allocation3], 1 }

</bundles_post_ra>
